<compile_context>
chip_gen: v6e
topology: v6e:2x2x1
jax: 0.10.0
libtpu: 0.0.40
codegen_flags: <defaults>
</compile_context>

<pallas_src>
import functools

import jax
import jax.numpy as jnp
import numpy as np
from jax.experimental import pallas as pl
from jax.experimental.pallas import tpu as pltpu

MAX_NUM_ACTION_CANDIDATES = 32  # kanachan constant


def _round_up(x, m):
    return -(-x // m) * m


def _decoder_kernel(rows_ref,   # SMEM (Bp,) int32   flat gather rows (scalar prefetch)
                    enc_ref,    # HBM  (B*S, D) f32  (memory_space=pl.ANY)
                    w1_ref,     # VMEM (D, F)
                    b1_ref,     # VMEM (1, F)
                    w2_ref,     # VMEM (1, F)   final weight, transposed
                    b2_ref,     # VMEM (1, 1)
                    out_ref,    # VMEM (1, tb)  lane-dense output block
                    xbuf,       # VMEM scratch (2, tb, D)   gather double buffer
                    sems,       # DMA semaphores (2,), one per buffer slot
                    *, tb: int, activation: str):
    bt = pl.program_id(0)
    nt = pl.num_programs(0)
    slot = jax.lax.rem(bt, 2)

    def issue_gather(tile_idx, slot_idx):
        # tb independent (1, D) row fetches, all signalling sems[slot_idx].
        base = tile_idx * tb

        def body(i, carry):
            row = rows_ref[base + i]
            pltpu.make_async_copy(
                enc_ref.at[pl.ds(row, 1), :],
                xbuf.at[slot_idx, pl.ds(i, 1), :],
                sems.at[slot_idx],
            ).start()
            return carry

        jax.lax.fori_loop(0, tb, body, None, unroll=min(8, tb))

    def wait_gather(slot_idx):
        # One wait per issued copy, all against the shared per-slot semaphore.
        def body(i, carry):
            pltpu.make_async_copy(
                enc_ref.at[pl.ds(0, 1), :],
                xbuf.at[slot_idx, pl.ds(i, 1), :],
                sems.at[slot_idx],
            ).wait()
            return carry

        jax.lax.fori_loop(0, tb, body, None, unroll=min(8, tb))

    # Prime the pipeline: the first grid step gathers its own rows.
    @pl.when(bt == 0)
    def _():
        issue_gather(0, 0)

    # Wait for this step's rows (issued during the previous step, or primed).
    wait_gather(slot)

    # Issue the next step's rows into the other slot; they land in HBM->VMEM
    # while this step computes / writes back and the grid advances.
    @pl.when(bt + 1 < nt)
    def _():
        issue_gather(bt + 1, 1 - slot)

    x = xbuf[slot]                                           # (tb, D)

    # ---- semifinal linear + (identity) dropout + activation -----------------
    h = jnp.dot(x, w1_ref[...], preferred_element_type=jnp.float32) + b1_ref[...]
    # TODO(synk): nn.Dropout is identity in eval/validation mode; training-mode
    # stochastic masking would need pltpu.prng_* based masking.
    if activation == 'relu':
        h = jnp.maximum(h, 0.0)
    elif activation == 'gelu':
        # exact (erf-based) GELU, matching torch.nn.GELU's default
        h = 0.5 * h * (1.0 + jax.lax.erf(h * (1.0 / np.sqrt(2.0))))
    else:
        raise ValueError(f'{activation}: invalid activation function')

    # ---- final F -> 1 linear as VPU multiply + lane reduce; lane-dense store -
    y = jnp.sum(h * w2_ref[...], axis=-1) + b2_ref[0, :]     # (tb,)
    out_ref[0, :] = y.astype(out_ref.dtype)


def decoder_forward(encode, index, w1, b1, w2, b2, *, activation: str = 'relu',
                    batch_tile: int | None = None):
    """Pallas port of Decoder.forward in training/validation mode.

    encode: (B, S, D) float32, index: (B,) int32 with 0 <= index < MAX.
    Returns prediction of shape (B,) float32.
    """
    B, S, D = encode.shape
    F = w1.shape[1]
    assert S >= MAX_NUM_ACTION_CANDIDATES

    if batch_tile is None:
        tb = 256 if B >= 256 else _round_up(B, 8)
    else:
        tb = batch_tile
    num_tiles = -(-B // tb)
    Bp = num_tiles * tb
    # Lane-dense (1, tb) output blocks need tb % 128 == 0 unless single-tile.
    assert num_tiles == 1 or tb % 128 == 0, \
        'batch_tile must be a multiple of 128 when the batch spans several tiles'

    # Precomputed flat gather rows: encode.reshape(B*S, D)[rows[b]] is the
    # selected candidate row for batch element b.  Padded entries point at row 0.
    # NOTE: clamping assumes the module's 0 <= index < 32 contract holds.
    off = S - MAX_NUM_ACTION_CANDIDATES
    idx = jnp.clip(index.astype(jnp.int32), 0, MAX_NUM_ACTION_CANDIDATES - 1)
    rows_b = jnp.arange(B, dtype=jnp.int32) * S + off + idx
    rows = jnp.zeros((Bp,), jnp.int32).at[:B].set(rows_b)

    enc2 = encode.reshape(B * S, D)        # row-major flatten; stays in HBM
    b1_2 = b1.reshape(1, F)
    w2_t = w2.reshape(1, F)
    b2_2 = b2.reshape(1, 1)

    kernel = functools.partial(_decoder_kernel, tb=tb, activation=activation)

    flops = 2 * Bp * D * F + 3 * Bp * F
    transcendentals = Bp * F if activation == 'gelu' else 0
    bytes_accessed = 4 * (Bp * D + D * F + 3 * F + 1 + 2 * Bp)

    grid_spec = pltpu.PrefetchScalarGridSpec(
        num_scalar_prefetch=1,
        grid=(num_tiles,),
        in_specs=[
            pl.BlockSpec(memory_space=pl.ANY),               # encode: raw HBM
            pl.BlockSpec((D, F), lambda b, r: (0, 0)),       # w1 (resident)
            pl.BlockSpec((1, F), lambda b, r: (0, 0)),       # b1
            pl.BlockSpec((1, F), lambda b, r: (0, 0)),       # w2^T
            pl.BlockSpec((1, 1), lambda b, r: (0, 0)),       # b2
        ],
        out_specs=pl.BlockSpec((1, tb), lambda b, r: (0, b)),  # lane-dense
        scratch_shapes=[pltpu.VMEM((2, tb, D), jnp.float32),   # gather double buffer
                        pltpu.SemaphoreType.DMA((2,))],        # one sem per slot
    )

    out = pl.pallas_call(
        kernel,
        out_shape=jax.ShapeDtypeStruct((1, Bp), jnp.float32),
        grid_spec=grid_spec,
        # "arbitrary": the gather pipeline carries DMA state across grid steps
        # (primed at program_id == 0), which requires sequential traversal.
        compiler_params=pltpu.CompilerParams(
            dimension_semantics=("arbitrary",)),
        cost_estimate=pl.CostEstimate(flops=flops,
                                      transcendentals=transcendentals,
                                      bytes_accessed=bytes_accessed),
    )(rows, enc2, w1, b1_2, w2_t, b2_2)

    return out[0, :B]   # torch.squeeze(prediction, dim=-1)


def _reference(encode, index, w1, b1, w2, b2, activation):
    b = jnp.arange(encode.shape[0])
    x = encode[b, encode.shape[1] - MAX_NUM_ACTION_CANDIDATES + index]
    h = x @ w1 + b1
    if activation == 'relu':
        h = jnp.maximum(h, 0.0)
    else:
        h = 0.5 * h * (1.0 + jax.lax.erf(h / np.sqrt(2.0)))
    return (h @ w2 + b2)[:, 0]


if __name__ == "__main__":
    def make_inputs(key, B, S, D, F):
        k_enc, k_idx, kw1, kb1, kw2, kb2 = jax.random.split(key, 6)
        encode = jax.random.normal(k_enc, (B, S, D), dtype=jnp.float32)
        index = jax.random.randint(k_idx, (B,), 0, MAX_NUM_ACTION_CANDIDATES,
                                   dtype=jnp.int32)
        # deterministic init matching nn.Linear's U(-1/sqrt(fan_in), +1/sqrt(fan_in))
        k1 = 1.0 / np.sqrt(D)
        w1 = jax.random.uniform(kw1, (D, F), jnp.float32, -k1, k1)   # (in, out)
        b1 = jax.random.uniform(kb1, (F,), jnp.float32, -k1, k1)
        k2 = 1.0 / np.sqrt(F)
        w2 = jax.random.uniform(kw2, (F, 1), jnp.float32, -k2, k2)
        b2 = jax.random.uniform(kb2, (1,), jnp.float32, -k2, k2)
        return encode, index, w1, b1, w2, b2

    key = jax.random.PRNGKey(0)
    key_a, key_b = jax.random.split(key)

    # Small single-tile case (relu), B=8, S=40, D=128, F=256.
    args = make_inputs(key_a, 8, 40, 128, 256)
    pred = jax.block_until_ready(decoder_forward(*args, activation='relu'))
    ref = _reference(*args, 'relu')
    np.testing.assert_allclose(np.asarray(pred), np.asarray(ref),
                               rtol=2e-3, atol=2e-3)
    assert pred.shape == (8,)

    # Multi-tile case exercising the cross-step double-buffered gather (gelu).
    args = make_inputs(key_b, 256, 40, 128, 256)
    pred = jax.block_until_ready(
        decoder_forward(*args, activation='gelu', batch_tile=128))
    ref = _reference(*args, 'gelu')
    np.testing.assert_allclose(np.asarray(pred), np.asarray(ref),
                               rtol=2e-3, atol=2e-3)
    assert pred.shape == (256,)

    print("KERNEL_OK")
</pallas_src>

<mosaic_0001>
module attributes {stable_mosaic.version = 11 : i64} {
  func.func @_decoder_kernel(%arg0: i32, %arg1: memref<8xi32, #tpu.memory_space<smem>>, %arg2: memref<320x128xf32, #tpu.memory_space<any>>, %arg3: memref<128x256xf32, #tpu.memory_space<vmem>>, %arg4: memref<1x256xf32, #tpu.memory_space<vmem>>, %arg5: memref<1x256xf32, #tpu.memory_space<vmem>>, %arg6: memref<1x1xf32, #tpu.memory_space<vmem>>, %arg7: memref<1x8xf32, #tpu.memory_space<vmem>>, %arg8: memref<2x8x128xf32, #tpu.memory_space<vmem>>, %arg9: memref<2x!tpu.dma_semaphore, #tpu.memory_space<semaphore_mem>>) attributes {dimension_semantics = [#tpu.dimension_semantics<arbitrary>], iteration_bounds = array<i64: 1>, scalar_prefetch = 1 : i64, scratch_operands = 2 : i64, tpu.core_type = #tpu.core_type<tc>, window_params = [{}, {pipeline_mode = #tpu.pipeline_mode<synchronous>, transform_indices = @transform_1, window_bounds = array<i64: 128, 256>}, {pipeline_mode = #tpu.pipeline_mode<synchronous>, transform_indices = @transform_2, window_bounds = array<i64: 1, 256>}, {pipeline_mode = #tpu.pipeline_mode<synchronous>, transform_indices = @transform_3, window_bounds = array<i64: 1, 256>}, {pipeline_mode = #tpu.pipeline_mode<synchronous>, transform_indices = @transform_4, window_bounds = array<i64: 1, 1>}, {transform_indices = @transform_5, window_bounds = array<i64: 1, 8>}]} {
    %c2_i32 = arith.constant 2 : i32
    %0 = arith.remsi %arg0, %c2_i32 : i32
    %c0_i32 = arith.constant 0 : i32
    %1 = arith.cmpi eq, %arg0, %c0_i32 : i32
    %2 = arith.extui %1 : i1 to i32
    %c0_i32_0 = arith.constant 0 : i32
    %3 = arith.cmpi ne, %2, %c0_i32_0 : i32
    scf.if %3 {
      %c0_i32_43 = arith.constant 0 : i32
      %c0_i32_44 = arith.constant 0 : i32
      %69 = arith.addi %c0_i32_44, %c0_i32_43 : i32
      %70 = arith.index_cast %69 : i32 to index
      %71 = memref.load %arg1[%70] : memref<8xi32, #tpu.memory_space<smem>>
      %c0_i32_45 = arith.constant 0 : i32
      %c0_i32_46 = arith.constant 0 : i32
      %c0_i32_47 = arith.constant 0 : i32
      %72 = tpu.memref_slice %arg2[%71, %c0_i32_47] : memref<320x128xf32, #tpu.memory_space<any>> -> memref<1x128xf32, #tpu.memory_space<any>>
      %c0_i32_48 = arith.constant 0 : i32
      %73 = tpu.memref_slice %arg8[%c0_i32_45, %c0_i32_43, %c0_i32_48] : memref<2x8x128xf32, #tpu.memory_space<vmem>> -> memref<1x1x128xf32, #tpu.memory_space<vmem>>
      %74 = tpu.memref_squeeze %73 : memref<1x1x128xf32, #tpu.memory_space<vmem>> -> memref<1x128xf32, #tpu.memory_space<vmem>>
      %75 = tpu.memref_slice %arg9[%c0_i32_46] : memref<2x!tpu.dma_semaphore, #tpu.memory_space<semaphore_mem>> -> memref<1x!tpu.dma_semaphore, #tpu.memory_space<semaphore_mem>>
      %76 = tpu.memref_squeeze %75 : memref<1x!tpu.dma_semaphore, #tpu.memory_space<semaphore_mem>> -> memref<!tpu.dma_semaphore, #tpu.memory_space<semaphore_mem>>
      tpu.enqueue_dma source(%72 : memref<1x128xf32, #tpu.memory_space<any>>) target(%74 : memref<1x128xf32, #tpu.memory_space<vmem>>) target_semaphore(%76 : memref<!tpu.dma_semaphore, #tpu.memory_space<semaphore_mem>>)
      %c1_i32_49 = arith.constant 1 : i32
      %c0_i32_50 = arith.constant 0 : i32
      %77 = arith.addi %c0_i32_50, %c1_i32_49 : i32
      %78 = arith.index_cast %77 : i32 to index
      %79 = memref.load %arg1[%78] : memref<8xi32, #tpu.memory_space<smem>>
      %c0_i32_51 = arith.constant 0 : i32
      %c0_i32_52 = arith.constant 0 : i32
      %c0_i32_53 = arith.constant 0 : i32
      %80 = tpu.memref_slice %arg2[%79, %c0_i32_53] : memref<320x128xf32, #tpu.memory_space<any>> -> memref<1x128xf32, #tpu.memory_space<any>>
      %c0_i32_54 = arith.constant 0 : i32
      %81 = tpu.memref_slice %arg8[%c0_i32_51, %c1_i32_49, %c0_i32_54] : memref<2x8x128xf32, #tpu.memory_space<vmem>> -> memref<1x1x128xf32, #tpu.memory_space<vmem>>
      %82 = tpu.memref_squeeze %81 : memref<1x1x128xf32, #tpu.memory_space<vmem>> -> memref<1x128xf32, #tpu.memory_space<vmem>>
      %83 = tpu.memref_slice %arg9[%c0_i32_52] : memref<2x!tpu.dma_semaphore, #tpu.memory_space<semaphore_mem>> -> memref<1x!tpu.dma_semaphore, #tpu.memory_space<semaphore_mem>>
      %84 = tpu.memref_squeeze %83 : memref<1x!tpu.dma_semaphore, #tpu.memory_space<semaphore_mem>> -> memref<!tpu.dma_semaphore, #tpu.memory_space<semaphore_mem>>
      tpu.enqueue_dma source(%80 : memref<1x128xf32, #tpu.memory_space<any>>) target(%82 : memref<1x128xf32, #tpu.memory_space<vmem>>) target_semaphore(%84 : memref<!tpu.dma_semaphore, #tpu.memory_space<semaphore_mem>>)
      %c2_i32_55 = arith.constant 2 : i32
      %c0_i32_56 = arith.constant 0 : i32
      %85 = arith.addi %c0_i32_56, %c2_i32_55 : i32
      %86 = arith.index_cast %85 : i32 to index
      %87 = memref.load %arg1[%86] : memref<8xi32, #tpu.memory_space<smem>>
      %c0_i32_57 = arith.constant 0 : i32
      %c0_i32_58 = arith.constant 0 : i32
      %c0_i32_59 = arith.constant 0 : i32
      %88 = tpu.memref_slice %arg2[%87, %c0_i32_59] : memref<320x128xf32, #tpu.memory_space<any>> -> memref<1x128xf32, #tpu.memory_space<any>>
      %c0_i32_60 = arith.constant 0 : i32
      %89 = tpu.memref_slice %arg8[%c0_i32_57, %c2_i32_55, %c0_i32_60] : memref<2x8x128xf32, #tpu.memory_space<vmem>> -> memref<1x1x128xf32, #tpu.memory_space<vmem>>
      %90 = tpu.memref_squeeze %89 : memref<1x1x128xf32, #tpu.memory_space<vmem>> -> memref<1x128xf32, #tpu.memory_space<vmem>>
      %91 = tpu.memref_slice %arg9[%c0_i32_58] : memref<2x!tpu.dma_semaphore, #tpu.memory_space<semaphore_mem>> -> memref<1x!tpu.dma_semaphore, #tpu.memory_space<semaphore_mem>>
      %92 = tpu.memref_squeeze %91 : memref<1x!tpu.dma_semaphore, #tpu.memory_space<semaphore_mem>> -> memref<!tpu.dma_semaphore, #tpu.memory_space<semaphore_mem>>
      tpu.enqueue_dma source(%88 : memref<1x128xf32, #tpu.memory_space<any>>) target(%90 : memref<1x128xf32, #tpu.memory_space<vmem>>) target_semaphore(%92 : memref<!tpu.dma_semaphore, #tpu.memory_space<semaphore_mem>>)
      %c3_i32_61 = arith.constant 3 : i32
      %c0_i32_62 = arith.constant 0 : i32
      %93 = arith.addi %c0_i32_62, %c3_i32_61 : i32
      %94 = arith.index_cast %93 : i32 to index
      %95 = memref.load %arg1[%94] : memref<8xi32, #tpu.memory_space<smem>>
      %c0_i32_63 = arith.constant 0 : i32
      %c0_i32_64 = arith.constant 0 : i32
      %c0_i32_65 = arith.constant 0 : i32
      %96 = tpu.memref_slice %arg2[%95, %c0_i32_65] : memref<320x128xf32, #tpu.memory_space<any>> -> memref<1x128xf32, #tpu.memory_space<any>>
      %c0_i32_66 = arith.constant 0 : i32
      %97 = tpu.memref_slice %arg8[%c0_i32_63, %c3_i32_61, %c0_i32_66] : memref<2x8x128xf32, #tpu.memory_space<vmem>> -> memref<1x1x128xf32, #tpu.memory_space<vmem>>
      %98 = tpu.memref_squeeze %97 : memref<1x1x128xf32, #tpu.memory_space<vmem>> -> memref<1x128xf32, #tpu.memory_space<vmem>>
      %99 = tpu.memref_slice %arg9[%c0_i32_64] : memref<2x!tpu.dma_semaphore, #tpu.memory_space<semaphore_mem>> -> memref<1x!tpu.dma_semaphore, #tpu.memory_space<semaphore_mem>>
      %100 = tpu.memref_squeeze %99 : memref<1x!tpu.dma_semaphore, #tpu.memory_space<semaphore_mem>> -> memref<!tpu.dma_semaphore, #tpu.memory_space<semaphore_mem>>
      tpu.enqueue_dma source(%96 : memref<1x128xf32, #tpu.memory_space<any>>) target(%98 : memref<1x128xf32, #tpu.memory_space<vmem>>) target_semaphore(%100 : memref<!tpu.dma_semaphore, #tpu.memory_space<semaphore_mem>>)
      %c4_i32_67 = arith.constant 4 : i32
      %c0_i32_68 = arith.constant 0 : i32
      %101 = arith.addi %c0_i32_68, %c4_i32_67 : i32
      %102 = arith.index_cast %101 : i32 to index
      %103 = memref.load %arg1[%102] : memref<8xi32, #tpu.memory_space<smem>>
      %c0_i32_69 = arith.constant 0 : i32
      %c0_i32_70 = arith.constant 0 : i32
      %c0_i32_71 = arith.constant 0 : i32
      %104 = tpu.memref_slice %arg2[%103, %c0_i32_71] : memref<320x128xf32, #tpu.memory_space<any>> -> memref<1x128xf32, #tpu.memory_space<any>>
      %c0_i32_72 = arith.constant 0 : i32
      %105 = tpu.memref_slice %arg8[%c0_i32_69, %c4_i32_67, %c0_i32_72] : memref<2x8x128xf32, #tpu.memory_space<vmem>> -> memref<1x1x128xf32, #tpu.memory_space<vmem>>
      %106 = tpu.memref_squeeze %105 : memref<1x1x128xf32, #tpu.memory_space<vmem>> -> memref<1x128xf32, #tpu.memory_space<vmem>>
      %107 = tpu.memref_slice %arg9[%c0_i32_70] : memref<2x!tpu.dma_semaphore, #tpu.memory_space<semaphore_mem>> -> memref<1x!tpu.dma_semaphore, #tpu.memory_space<semaphore_mem>>
      %108 = tpu.memref_squeeze %107 : memref<1x!tpu.dma_semaphore, #tpu.memory_space<semaphore_mem>> -> memref<!tpu.dma_semaphore, #tpu.memory_space<semaphore_mem>>
      tpu.enqueue_dma source(%104 : memref<1x128xf32, #tpu.memory_space<any>>) target(%106 : memref<1x128xf32, #tpu.memory_space<vmem>>) target_semaphore(%108 : memref<!tpu.dma_semaphore, #tpu.memory_space<semaphore_mem>>)
      %c5_i32_73 = arith.constant 5 : i32
      %c0_i32_74 = arith.constant 0 : i32
      %109 = arith.addi %c0_i32_74, %c5_i32_73 : i32
      %110 = arith.index_cast %109 : i32 to index
      %111 = memref.load %arg1[%110] : memref<8xi32, #tpu.memory_space<smem>>
      %c0_i32_75 = arith.constant 0 : i32
      %c0_i32_76 = arith.constant 0 : i32
      %c0_i32_77 = arith.constant 0 : i32
      %112 = tpu.memref_slice %arg2[%111, %c0_i32_77] : memref<320x128xf32, #tpu.memory_space<any>> -> memref<1x128xf32, #tpu.memory_space<any>>
      %c0_i32_78 = arith.constant 0 : i32
      %113 = tpu.memref_slice %arg8[%c0_i32_75, %c5_i32_73, %c0_i32_78] : memref<2x8x128xf32, #tpu.memory_space<vmem>> -> memref<1x1x128xf32, #tpu.memory_space<vmem>>
      %114 = tpu.memref_squeeze %113 : memref<1x1x128xf32, #tpu.memory_space<vmem>> -> memref<1x128xf32, #tpu.memory_space<vmem>>
      %115 = tpu.memref_slice %arg9[%c0_i32_76] : memref<2x!tpu.dma_semaphore, #tpu.memory_space<semaphore_mem>> -> memref<1x!tpu.dma_semaphore, #tpu.memory_space<semaphore_mem>>
      %116 = tpu.memref_squeeze %115 : memref<1x!tpu.dma_semaphore, #tpu.memory_space<semaphore_mem>> -> memref<!tpu.dma_semaphore, #tpu.memory_space<semaphore_mem>>
      tpu.enqueue_dma source(%112 : memref<1x128xf32, #tpu.memory_space<any>>) target(%114 : memref<1x128xf32, #tpu.memory_space<vmem>>) target_semaphore(%116 : memref<!tpu.dma_semaphore, #tpu.memory_space<semaphore_mem>>)
      %c6_i32_79 = arith.constant 6 : i32
      %c0_i32_80 = arith.constant 0 : i32
      %117 = arith.addi %c0_i32_80, %c6_i32_79 : i32
      %118 = arith.index_cast %117 : i32 to index
      %119 = memref.load %arg1[%118] : memref<8xi32, #tpu.memory_space<smem>>
      %c0_i32_81 = arith.constant 0 : i32
      %c0_i32_82 = arith.constant 0 : i32
      %c0_i32_83 = arith.constant 0 : i32
      %120 = tpu.memref_slice %arg2[%119, %c0_i32_83] : memref<320x128xf32, #tpu.memory_space<any>> -> memref<1x128xf32, #tpu.memory_space<any>>
      %c0_i32_84 = arith.constant 0 : i32
      %121 = tpu.memref_slice %arg8[%c0_i32_81, %c6_i32_79, %c0_i32_84] : memref<2x8x128xf32, #tpu.memory_space<vmem>> -> memref<1x1x128xf32, #tpu.memory_space<vmem>>
      %122 = tpu.memref_squeeze %121 : memref<1x1x128xf32, #tpu.memory_space<vmem>> -> memref<1x128xf32, #tpu.memory_space<vmem>>
      %123 = tpu.memref_slice %arg9[%c0_i32_82] : memref<2x!tpu.dma_semaphore, #tpu.memory_space<semaphore_mem>> -> memref<1x!tpu.dma_semaphore, #tpu.memory_space<semaphore_mem>>
      %124 = tpu.memref_squeeze %123 : memref<1x!tpu.dma_semaphore, #tpu.memory_space<semaphore_mem>> -> memref<!tpu.dma_semaphore, #tpu.memory_space<semaphore_mem>>
      tpu.enqueue_dma source(%120 : memref<1x128xf32, #tpu.memory_space<any>>) target(%122 : memref<1x128xf32, #tpu.memory_space<vmem>>) target_semaphore(%124 : memref<!tpu.dma_semaphore, #tpu.memory_space<semaphore_mem>>)
      %c7_i32_85 = arith.constant 7 : i32
      %c0_i32_86 = arith.constant 0 : i32
      %125 = arith.addi %c0_i32_86, %c7_i32_85 : i32
      %126 = arith.index_cast %125 : i32 to index
      %127 = memref.load %arg1[%126] : memref<8xi32, #tpu.memory_space<smem>>
      %c0_i32_87 = arith.constant 0 : i32
      %c0_i32_88 = arith.constant 0 : i32
      %c0_i32_89 = arith.constant 0 : i32
      %128 = tpu.memref_slice %arg2[%127, %c0_i32_89] : memref<320x128xf32, #tpu.memory_space<any>> -> memref<1x128xf32, #tpu.memory_space<any>>
      %c0_i32_90 = arith.constant 0 : i32
      %129 = tpu.memref_slice %arg8[%c0_i32_87, %c7_i32_85, %c0_i32_90] : memref<2x8x128xf32, #tpu.memory_space<vmem>> -> memref<1x1x128xf32, #tpu.memory_space<vmem>>
      %130 = tpu.memref_squeeze %129 : memref<1x1x128xf32, #tpu.memory_space<vmem>> -> memref<1x128xf32, #tpu.memory_space<vmem>>
      %131 = tpu.memref_slice %arg9[%c0_i32_88] : memref<2x!tpu.dma_semaphore, #tpu.memory_space<semaphore_mem>> -> memref<1x!tpu.dma_semaphore, #tpu.memory_space<semaphore_mem>>
      %132 = tpu.memref_squeeze %131 : memref<1x!tpu.dma_semaphore, #tpu.memory_space<semaphore_mem>> -> memref<!tpu.dma_semaphore, #tpu.memory_space<semaphore_mem>>
      tpu.enqueue_dma source(%128 : memref<1x128xf32, #tpu.memory_space<any>>) target(%130 : memref<1x128xf32, #tpu.memory_space<vmem>>) target_semaphore(%132 : memref<!tpu.dma_semaphore, #tpu.memory_space<semaphore_mem>>)
      %c8_i32_91 = arith.constant 8 : i32
    } else {
    }
    %c0_i32_1 = arith.constant 0 : i32
    %c0_i32_2 = arith.constant 0 : i32
    %c0_i32_3 = arith.constant 0 : i32
    %4 = tpu.memref_slice %arg2[%c0_i32_2, %c0_i32_3] : memref<320x128xf32, #tpu.memory_space<any>> -> memref<1x128xf32, #tpu.memory_space<any>>
    %c0_i32_4 = arith.constant 0 : i32
    %5 = tpu.memref_slice %arg8[%0, %c0_i32_1, %c0_i32_4] : memref<2x8x128xf32, #tpu.memory_space<vmem>> -> memref<1x1x128xf32, #tpu.memory_space<vmem>>
    %6 = tpu.memref_squeeze %5 : memref<1x1x128xf32, #tpu.memory_space<vmem>> -> memref<1x128xf32, #tpu.memory_space<vmem>>
    %7 = tpu.memref_slice %arg9[%0] : memref<2x!tpu.dma_semaphore, #tpu.memory_space<semaphore_mem>> -> memref<1x!tpu.dma_semaphore, #tpu.memory_space<semaphore_mem>>
    %8 = tpu.memref_squeeze %7 : memref<1x!tpu.dma_semaphore, #tpu.memory_space<semaphore_mem>> -> memref<!tpu.dma_semaphore, #tpu.memory_space<semaphore_mem>>
    tpu.wait_dma2 semaphore(%8 : memref<!tpu.dma_semaphore, #tpu.memory_space<semaphore_mem>>) src(%4 : memref<1x128xf32, #tpu.memory_space<any>>) dst(%6 : memref<1x128xf32, #tpu.memory_space<vmem>>)
    %c1_i32 = arith.constant 1 : i32
    %c0_i32_5 = arith.constant 0 : i32
    %c0_i32_6 = arith.constant 0 : i32
    %9 = tpu.memref_slice %arg2[%c0_i32_5, %c0_i32_6] : memref<320x128xf32, #tpu.memory_space<any>> -> memref<1x128xf32, #tpu.memory_space<any>>
    %c0_i32_7 = arith.constant 0 : i32
    %10 = tpu.memref_slice %arg8[%0, %c1_i32, %c0_i32_7] : memref<2x8x128xf32, #tpu.memory_space<vmem>> -> memref<1x1x128xf32, #tpu.memory_space<vmem>>
    %11 = tpu.memref_squeeze %10 : memref<1x1x128xf32, #tpu.memory_space<vmem>> -> memref<1x128xf32, #tpu.memory_space<vmem>>
    %12 = tpu.memref_slice %arg9[%0] : memref<2x!tpu.dma_semaphore, #tpu.memory_space<semaphore_mem>> -> memref<1x!tpu.dma_semaphore, #tpu.memory_space<semaphore_mem>>
    %13 = tpu.memref_squeeze %12 : memref<1x!tpu.dma_semaphore, #tpu.memory_space<semaphore_mem>> -> memref<!tpu.dma_semaphore, #tpu.memory_space<semaphore_mem>>
    tpu.wait_dma2 semaphore(%13 : memref<!tpu.dma_semaphore, #tpu.memory_space<semaphore_mem>>) src(%9 : memref<1x128xf32, #tpu.memory_space<any>>) dst(%11 : memref<1x128xf32, #tpu.memory_space<vmem>>)
    %c2_i32_8 = arith.constant 2 : i32
    %c0_i32_9 = arith.constant 0 : i32
    %c0_i32_10 = arith.constant 0 : i32
    %14 = tpu.memref_slice %arg2[%c0_i32_9, %c0_i32_10] : memref<320x128xf32, #tpu.memory_space<any>> -> memref<1x128xf32, #tpu.memory_space<any>>
    %c0_i32_11 = arith.constant 0 : i32
    %15 = tpu.memref_slice %arg8[%0, %c2_i32_8, %c0_i32_11] : memref<2x8x128xf32, #tpu.memory_space<vmem>> -> memref<1x1x128xf32, #tpu.memory_space<vmem>>
    %16 = tpu.memref_squeeze %15 : memref<1x1x128xf32, #tpu.memory_space<vmem>> -> memref<1x128xf32, #tpu.memory_space<vmem>>
    %17 = tpu.memref_slice %arg9[%0] : memref<2x!tpu.dma_semaphore, #tpu.memory_space<semaphore_mem>> -> memref<1x!tpu.dma_semaphore, #tpu.memory_space<semaphore_mem>>
    %18 = tpu.memref_squeeze %17 : memref<1x!tpu.dma_semaphore, #tpu.memory_space<semaphore_mem>> -> memref<!tpu.dma_semaphore, #tpu.memory_space<semaphore_mem>>
    tpu.wait_dma2 semaphore(%18 : memref<!tpu.dma_semaphore, #tpu.memory_space<semaphore_mem>>) src(%14 : memref<1x128xf32, #tpu.memory_space<any>>) dst(%16 : memref<1x128xf32, #tpu.memory_space<vmem>>)
    %c3_i32 = arith.constant 3 : i32
    %c0_i32_12 = arith.constant 0 : i32
    %c0_i32_13 = arith.constant 0 : i32
    %19 = tpu.memref_slice %arg2[%c0_i32_12, %c0_i32_13] : memref<320x128xf32, #tpu.memory_space<any>> -> memref<1x128xf32, #tpu.memory_space<any>>
    %c0_i32_14 = arith.constant 0 : i32
    %20 = tpu.memref_slice %arg8[%0, %c3_i32, %c0_i32_14] : memref<2x8x128xf32, #tpu.memory_space<vmem>> -> memref<1x1x128xf32, #tpu.memory_space<vmem>>
    %21 = tpu.memref_squeeze %20 : memref<1x1x128xf32, #tpu.memory_space<vmem>> -> memref<1x128xf32, #tpu.memory_space<vmem>>
    %22 = tpu.memref_slice %arg9[%0] : memref<2x!tpu.dma_semaphore, #tpu.memory_space<semaphore_mem>> -> memref<1x!tpu.dma_semaphore, #tpu.memory_space<semaphore_mem>>
    %23 = tpu.memref_squeeze %22 : memref<1x!tpu.dma_semaphore, #tpu.memory_space<semaphore_mem>> -> memref<!tpu.dma_semaphore, #tpu.memory_space<semaphore_mem>>
    tpu.wait_dma2 semaphore(%23 : memref<!tpu.dma_semaphore, #tpu.memory_space<semaphore_mem>>) src(%19 : memref<1x128xf32, #tpu.memory_space<any>>) dst(%21 : memref<1x128xf32, #tpu.memory_space<vmem>>)
    %c4_i32 = arith.constant 4 : i32
    %c0_i32_15 = arith.constant 0 : i32
    %c0_i32_16 = arith.constant 0 : i32
    %24 = tpu.memref_slice %arg2[%c0_i32_15, %c0_i32_16] : memref<320x128xf32, #tpu.memory_space<any>> -> memref<1x128xf32, #tpu.memory_space<any>>
    %c0_i32_17 = arith.constant 0 : i32
    %25 = tpu.memref_slice %arg8[%0, %c4_i32, %c0_i32_17] : memref<2x8x128xf32, #tpu.memory_space<vmem>> -> memref<1x1x128xf32, #tpu.memory_space<vmem>>
    %26 = tpu.memref_squeeze %25 : memref<1x1x128xf32, #tpu.memory_space<vmem>> -> memref<1x128xf32, #tpu.memory_space<vmem>>
    %27 = tpu.memref_slice %arg9[%0] : memref<2x!tpu.dma_semaphore, #tpu.memory_space<semaphore_mem>> -> memref<1x!tpu.dma_semaphore, #tpu.memory_space<semaphore_mem>>
    %28 = tpu.memref_squeeze %27 : memref<1x!tpu.dma_semaphore, #tpu.memory_space<semaphore_mem>> -> memref<!tpu.dma_semaphore, #tpu.memory_space<semaphore_mem>>
    tpu.wait_dma2 semaphore(%28 : memref<!tpu.dma_semaphore, #tpu.memory_space<semaphore_mem>>) src(%24 : memref<1x128xf32, #tpu.memory_space<any>>) dst(%26 : memref<1x128xf32, #tpu.memory_space<vmem>>)
    %c5_i32 = arith.constant 5 : i32
    %c0_i32_18 = arith.constant 0 : i32
    %c0_i32_19 = arith.constant 0 : i32
    %29 = tpu.memref_slice %arg2[%c0_i32_18, %c0_i32_19] : memref<320x128xf32, #tpu.memory_space<any>> -> memref<1x128xf32, #tpu.memory_space<any>>
    %c0_i32_20 = arith.constant 0 : i32
    %30 = tpu.memref_slice %arg8[%0, %c5_i32, %c0_i32_20] : memref<2x8x128xf32, #tpu.memory_space<vmem>> -> memref<1x1x128xf32, #tpu.memory_space<vmem>>
    %31 = tpu.memref_squeeze %30 : memref<1x1x128xf32, #tpu.memory_space<vmem>> -> memref<1x128xf32, #tpu.memory_space<vmem>>
    %32 = tpu.memref_slice %arg9[%0] : memref<2x!tpu.dma_semaphore, #tpu.memory_space<semaphore_mem>> -> memref<1x!tpu.dma_semaphore, #tpu.memory_space<semaphore_mem>>
    %33 = tpu.memref_squeeze %32 : memref<1x!tpu.dma_semaphore, #tpu.memory_space<semaphore_mem>> -> memref<!tpu.dma_semaphore, #tpu.memory_space<semaphore_mem>>
    tpu.wait_dma2 semaphore(%33 : memref<!tpu.dma_semaphore, #tpu.memory_space<semaphore_mem>>) src(%29 : memref<1x128xf32, #tpu.memory_space<any>>) dst(%31 : memref<1x128xf32, #tpu.memory_space<vmem>>)
    %c6_i32 = arith.constant 6 : i32
    %c0_i32_21 = arith.constant 0 : i32
    %c0_i32_22 = arith.constant 0 : i32
    %34 = tpu.memref_slice %arg2[%c0_i32_21, %c0_i32_22] : memref<320x128xf32, #tpu.memory_space<any>> -> memref<1x128xf32, #tpu.memory_space<any>>
    %c0_i32_23 = arith.constant 0 : i32
    %35 = tpu.memref_slice %arg8[%0, %c6_i32, %c0_i32_23] : memref<2x8x128xf32, #tpu.memory_space<vmem>> -> memref<1x1x128xf32, #tpu.memory_space<vmem>>
    %36 = tpu.memref_squeeze %35 : memref<1x1x128xf32, #tpu.memory_space<vmem>> -> memref<1x128xf32, #tpu.memory_space<vmem>>
    %37 = tpu.memref_slice %arg9[%0] : memref<2x!tpu.dma_semaphore, #tpu.memory_space<semaphore_mem>> -> memref<1x!tpu.dma_semaphore, #tpu.memory_space<semaphore_mem>>
    %38 = tpu.memref_squeeze %37 : memref<1x!tpu.dma_semaphore, #tpu.memory_space<semaphore_mem>> -> memref<!tpu.dma_semaphore, #tpu.memory_space<semaphore_mem>>
    tpu.wait_dma2 semaphore(%38 : memref<!tpu.dma_semaphore, #tpu.memory_space<semaphore_mem>>) src(%34 : memref<1x128xf32, #tpu.memory_space<any>>) dst(%36 : memref<1x128xf32, #tpu.memory_space<vmem>>)
    %c7_i32 = arith.constant 7 : i32
    %c0_i32_24 = arith.constant 0 : i32
    %c0_i32_25 = arith.constant 0 : i32
    %39 = tpu.memref_slice %arg2[%c0_i32_24, %c0_i32_25] : memref<320x128xf32, #tpu.memory_space<any>> -> memref<1x128xf32, #tpu.memory_space<any>>
    %c0_i32_26 = arith.constant 0 : i32
    %40 = tpu.memref_slice %arg8[%0, %c7_i32, %c0_i32_26] : memref<2x8x128xf32, #tpu.memory_space<vmem>> -> memref<1x1x128xf32, #tpu.memory_space<vmem>>
    %41 = tpu.memref_squeeze %40 : memref<1x1x128xf32, #tpu.memory_space<vmem>> -> memref<1x128xf32, #tpu.memory_space<vmem>>
    %42 = tpu.memref_slice %arg9[%0] : memref<2x!tpu.dma_semaphore, #tpu.memory_space<semaphore_mem>> -> memref<1x!tpu.dma_semaphore, #tpu.memory_space<semaphore_mem>>
    %43 = tpu.memref_squeeze %42 : memref<1x!tpu.dma_semaphore, #tpu.memory_space<semaphore_mem>> -> memref<!tpu.dma_semaphore, #tpu.memory_space<semaphore_mem>>
    tpu.wait_dma2 semaphore(%43 : memref<!tpu.dma_semaphore, #tpu.memory_space<semaphore_mem>>) src(%39 : memref<1x128xf32, #tpu.memory_space<any>>) dst(%41 : memref<1x128xf32, #tpu.memory_space<vmem>>)
    %c8_i32 = arith.constant 8 : i32
    %c1_i32_27 = arith.constant 1 : i32
    %44 = arith.addi %arg0, %c1_i32_27 : i32
    %c1_i32_28 = arith.constant 1 : i32
    %45 = arith.cmpi slt, %44, %c1_i32_28 : i32
    %46 = arith.extui %45 : i1 to i32
    %c0_i32_29 = arith.constant 0 : i32
    %47 = arith.cmpi ne, %46, %c0_i32_29 : i32
    scf.if %47 {
      %c1_i32_43 = arith.constant 1 : i32
      %69 = arith.addi %arg0, %c1_i32_43 : i32
      %c1_i32_44 = arith.constant 1 : i32
      %70 = arith.subi %c1_i32_44, %0 : i32
      %c8_i32_45 = arith.constant 8 : i32
      %71 = arith.muli %69, %c8_i32_45 : i32
      %c0_i32_46 = arith.constant 0 : i32
      %72 = arith.addi %71, %c0_i32_46 : i32
      %73 = arith.index_cast %72 : i32 to index
      %74 = memref.load %arg1[%73] : memref<8xi32, #tpu.memory_space<smem>>
      %c0_i32_47 = arith.constant 0 : i32
      %75 = tpu.memref_slice %arg2[%74, %c0_i32_47] : memref<320x128xf32, #tpu.memory_space<any>> -> memref<1x128xf32, #tpu.memory_space<any>>
      %c0_i32_48 = arith.constant 0 : i32
      %76 = tpu.memref_slice %arg8[%70, %c0_i32_46, %c0_i32_48] : memref<2x8x128xf32, #tpu.memory_space<vmem>> -> memref<1x1x128xf32, #tpu.memory_space<vmem>>
      %77 = tpu.memref_squeeze %76 : memref<1x1x128xf32, #tpu.memory_space<vmem>> -> memref<1x128xf32, #tpu.memory_space<vmem>>
      %78 = tpu.memref_slice %arg9[%70] : memref<2x!tpu.dma_semaphore, #tpu.memory_space<semaphore_mem>> -> memref<1x!tpu.dma_semaphore, #tpu.memory_space<semaphore_mem>>
      %79 = tpu.memref_squeeze %78 : memref<1x!tpu.dma_semaphore, #tpu.memory_space<semaphore_mem>> -> memref<!tpu.dma_semaphore, #tpu.memory_space<semaphore_mem>>
      tpu.enqueue_dma source(%75 : memref<1x128xf32, #tpu.memory_space<any>>) target(%77 : memref<1x128xf32, #tpu.memory_space<vmem>>) target_semaphore(%79 : memref<!tpu.dma_semaphore, #tpu.memory_space<semaphore_mem>>)
      %c1_i32_49 = arith.constant 1 : i32
      %80 = arith.addi %71, %c1_i32_49 : i32
      %81 = arith.index_cast %80 : i32 to index
      %82 = memref.load %arg1[%81] : memref<8xi32, #tpu.memory_space<smem>>
      %c0_i32_50 = arith.constant 0 : i32
      %83 = tpu.memref_slice %arg2[%82, %c0_i32_50] : memref<320x128xf32, #tpu.memory_space<any>> -> memref<1x128xf32, #tpu.memory_space<any>>
      %c0_i32_51 = arith.constant 0 : i32
      %84 = tpu.memref_slice %arg8[%70, %c1_i32_49, %c0_i32_51] : memref<2x8x128xf32, #tpu.memory_space<vmem>> -> memref<1x1x128xf32, #tpu.memory_space<vmem>>
      %85 = tpu.memref_squeeze %84 : memref<1x1x128xf32, #tpu.memory_space<vmem>> -> memref<1x128xf32, #tpu.memory_space<vmem>>
      %86 = tpu.memref_slice %arg9[%70] : memref<2x!tpu.dma_semaphore, #tpu.memory_space<semaphore_mem>> -> memref<1x!tpu.dma_semaphore, #tpu.memory_space<semaphore_mem>>
      %87 = tpu.memref_squeeze %86 : memref<1x!tpu.dma_semaphore, #tpu.memory_space<semaphore_mem>> -> memref<!tpu.dma_semaphore, #tpu.memory_space<semaphore_mem>>
      tpu.enqueue_dma source(%83 : memref<1x128xf32, #tpu.memory_space<any>>) target(%85 : memref<1x128xf32, #tpu.memory_space<vmem>>) target_semaphore(%87 : memref<!tpu.dma_semaphore, #tpu.memory_space<semaphore_mem>>)
      %c2_i32_52 = arith.constant 2 : i32
      %88 = arith.addi %71, %c2_i32_52 : i32
      %89 = arith.index_cast %88 : i32 to index
      %90 = memref.load %arg1[%89] : memref<8xi32, #tpu.memory_space<smem>>
      %c0_i32_53 = arith.constant 0 : i32
      %91 = tpu.memref_slice %arg2[%90, %c0_i32_53] : memref<320x128xf32, #tpu.memory_space<any>> -> memref<1x128xf32, #tpu.memory_space<any>>
      %c0_i32_54 = arith.constant 0 : i32
      %92 = tpu.memref_slice %arg8[%70, %c2_i32_52, %c0_i32_54] : memref<2x8x128xf32, #tpu.memory_space<vmem>> -> memref<1x1x128xf32, #tpu.memory_space<vmem>>
      %93 = tpu.memref_squeeze %92 : memref<1x1x128xf32, #tpu.memory_space<vmem>> -> memref<1x128xf32, #tpu.memory_space<vmem>>
      %94 = tpu.memref_slice %arg9[%70] : memref<2x!tpu.dma_semaphore, #tpu.memory_space<semaphore_mem>> -> memref<1x!tpu.dma_semaphore, #tpu.memory_space<semaphore_mem>>
      %95 = tpu.memref_squeeze %94 : memref<1x!tpu.dma_semaphore, #tpu.memory_space<semaphore_mem>> -> memref<!tpu.dma_semaphore, #tpu.memory_space<semaphore_mem>>
      tpu.enqueue_dma source(%91 : memref<1x128xf32, #tpu.memory_space<any>>) target(%93 : memref<1x128xf32, #tpu.memory_space<vmem>>) target_semaphore(%95 : memref<!tpu.dma_semaphore, #tpu.memory_space<semaphore_mem>>)
      %c3_i32_55 = arith.constant 3 : i32
      %96 = arith.addi %71, %c3_i32_55 : i32
      %97 = arith.index_cast %96 : i32 to index
      %98 = memref.load %arg1[%97] : memref<8xi32, #tpu.memory_space<smem>>
      %c0_i32_56 = arith.constant 0 : i32
      %99 = tpu.memref_slice %arg2[%98, %c0_i32_56] : memref<320x128xf32, #tpu.memory_space<any>> -> memref<1x128xf32, #tpu.memory_space<any>>
      %c0_i32_57 = arith.constant 0 : i32
      %100 = tpu.memref_slice %arg8[%70, %c3_i32_55, %c0_i32_57] : memref<2x8x128xf32, #tpu.memory_space<vmem>> -> memref<1x1x128xf32, #tpu.memory_space<vmem>>
      %101 = tpu.memref_squeeze %100 : memref<1x1x128xf32, #tpu.memory_space<vmem>> -> memref<1x128xf32, #tpu.memory_space<vmem>>
      %102 = tpu.memref_slice %arg9[%70] : memref<2x!tpu.dma_semaphore, #tpu.memory_space<semaphore_mem>> -> memref<1x!tpu.dma_semaphore, #tpu.memory_space<semaphore_mem>>
      %103 = tpu.memref_squeeze %102 : memref<1x!tpu.dma_semaphore, #tpu.memory_space<semaphore_mem>> -> memref<!tpu.dma_semaphore, #tpu.memory_space<semaphore_mem>>
      tpu.enqueue_dma source(%99 : memref<1x128xf32, #tpu.memory_space<any>>) target(%101 : memref<1x128xf32, #tpu.memory_space<vmem>>) target_semaphore(%103 : memref<!tpu.dma_semaphore, #tpu.memory_space<semaphore_mem>>)
      %c4_i32_58 = arith.constant 4 : i32
      %104 = arith.addi %71, %c4_i32_58 : i32
      %105 = arith.index_cast %104 : i32 to index
      %106 = memref.load %arg1[%105] : memref<8xi32, #tpu.memory_space<smem>>
      %c0_i32_59 = arith.constant 0 : i32
      %107 = tpu.memref_slice %arg2[%106, %c0_i32_59] : memref<320x128xf32, #tpu.memory_space<any>> -> memref<1x128xf32, #tpu.memory_space<any>>
      %c0_i32_60 = arith.constant 0 : i32
      %108 = tpu.memref_slice %arg8[%70, %c4_i32_58, %c0_i32_60] : memref<2x8x128xf32, #tpu.memory_space<vmem>> -> memref<1x1x128xf32, #tpu.memory_space<vmem>>
      %109 = tpu.memref_squeeze %108 : memref<1x1x128xf32, #tpu.memory_space<vmem>> -> memref<1x128xf32, #tpu.memory_space<vmem>>
      %110 = tpu.memref_slice %arg9[%70] : memref<2x!tpu.dma_semaphore, #tpu.memory_space<semaphore_mem>> -> memref<1x!tpu.dma_semaphore, #tpu.memory_space<semaphore_mem>>
      %111 = tpu.memref_squeeze %110 : memref<1x!tpu.dma_semaphore, #tpu.memory_space<semaphore_mem>> -> memref<!tpu.dma_semaphore, #tpu.memory_space<semaphore_mem>>
      tpu.enqueue_dma source(%107 : memref<1x128xf32, #tpu.memory_space<any>>) target(%109 : memref<1x128xf32, #tpu.memory_space<vmem>>) target_semaphore(%111 : memref<!tpu.dma_semaphore, #tpu.memory_space<semaphore_mem>>)
      %c5_i32_61 = arith.constant 5 : i32
      %112 = arith.addi %71, %c5_i32_61 : i32
      %113 = arith.index_cast %112 : i32 to index
      %114 = memref.load %arg1[%113] : memref<8xi32, #tpu.memory_space<smem>>
      %c0_i32_62 = arith.constant 0 : i32
      %115 = tpu.memref_slice %arg2[%114, %c0_i32_62] : memref<320x128xf32, #tpu.memory_space<any>> -> memref<1x128xf32, #tpu.memory_space<any>>
      %c0_i32_63 = arith.constant 0 : i32
      %116 = tpu.memref_slice %arg8[%70, %c5_i32_61, %c0_i32_63] : memref<2x8x128xf32, #tpu.memory_space<vmem>> -> memref<1x1x128xf32, #tpu.memory_space<vmem>>
      %117 = tpu.memref_squeeze %116 : memref<1x1x128xf32, #tpu.memory_space<vmem>> -> memref<1x128xf32, #tpu.memory_space<vmem>>
      %118 = tpu.memref_slice %arg9[%70] : memref<2x!tpu.dma_semaphore, #tpu.memory_space<semaphore_mem>> -> memref<1x!tpu.dma_semaphore, #tpu.memory_space<semaphore_mem>>
      %119 = tpu.memref_squeeze %118 : memref<1x!tpu.dma_semaphore, #tpu.memory_space<semaphore_mem>> -> memref<!tpu.dma_semaphore, #tpu.memory_space<semaphore_mem>>
      tpu.enqueue_dma source(%115 : memref<1x128xf32, #tpu.memory_space<any>>) target(%117 : memref<1x128xf32, #tpu.memory_space<vmem>>) target_semaphore(%119 : memref<!tpu.dma_semaphore, #tpu.memory_space<semaphore_mem>>)
      %c6_i32_64 = arith.constant 6 : i32
      %120 = arith.addi %71, %c6_i32_64 : i32
      %121 = arith.index_cast %120 : i32 to index
      %122 = memref.load %arg1[%121] : memref<8xi32, #tpu.memory_space<smem>>
      %c0_i32_65 = arith.constant 0 : i32
      %123 = tpu.memref_slice %arg2[%122, %c0_i32_65] : memref<320x128xf32, #tpu.memory_space<any>> -> memref<1x128xf32, #tpu.memory_space<any>>
      %c0_i32_66 = arith.constant 0 : i32
      %124 = tpu.memref_slice %arg8[%70, %c6_i32_64, %c0_i32_66] : memref<2x8x128xf32, #tpu.memory_space<vmem>> -> memref<1x1x128xf32, #tpu.memory_space<vmem>>
      %125 = tpu.memref_squeeze %124 : memref<1x1x128xf32, #tpu.memory_space<vmem>> -> memref<1x128xf32, #tpu.memory_space<vmem>>
      %126 = tpu.memref_slice %arg9[%70] : memref<2x!tpu.dma_semaphore, #tpu.memory_space<semaphore_mem>> -> memref<1x!tpu.dma_semaphore, #tpu.memory_space<semaphore_mem>>
      %127 = tpu.memref_squeeze %126 : memref<1x!tpu.dma_semaphore, #tpu.memory_space<semaphore_mem>> -> memref<!tpu.dma_semaphore, #tpu.memory_space<semaphore_mem>>
      tpu.enqueue_dma source(%123 : memref<1x128xf32, #tpu.memory_space<any>>) target(%125 : memref<1x128xf32, #tpu.memory_space<vmem>>) target_semaphore(%127 : memref<!tpu.dma_semaphore, #tpu.memory_space<semaphore_mem>>)
      %c7_i32_67 = arith.constant 7 : i32
      %128 = arith.addi %71, %c7_i32_67 : i32
      %129 = arith.index_cast %128 : i32 to index
      %130 = memref.load %arg1[%129] : memref<8xi32, #tpu.memory_space<smem>>
      %c0_i32_68 = arith.constant 0 : i32
      %131 = tpu.memref_slice %arg2[%130, %c0_i32_68] : memref<320x128xf32, #tpu.memory_space<any>> -> memref<1x128xf32, #tpu.memory_space<any>>
      %c0_i32_69 = arith.constant 0 : i32
      %132 = tpu.memref_slice %arg8[%70, %c7_i32_67, %c0_i32_69] : memref<2x8x128xf32, #tpu.memory_space<vmem>> -> memref<1x1x128xf32, #tpu.memory_space<vmem>>
      %133 = tpu.memref_squeeze %132 : memref<1x1x128xf32, #tpu.memory_space<vmem>> -> memref<1x128xf32, #tpu.memory_space<vmem>>
      %134 = tpu.memref_slice %arg9[%70] : memref<2x!tpu.dma_semaphore, #tpu.memory_space<semaphore_mem>> -> memref<1x!tpu.dma_semaphore, #tpu.memory_space<semaphore_mem>>
      %135 = tpu.memref_squeeze %134 : memref<1x!tpu.dma_semaphore, #tpu.memory_space<semaphore_mem>> -> memref<!tpu.dma_semaphore, #tpu.memory_space<semaphore_mem>>
      tpu.enqueue_dma source(%131 : memref<1x128xf32, #tpu.memory_space<any>>) target(%133 : memref<1x128xf32, #tpu.memory_space<vmem>>) target_semaphore(%135 : memref<!tpu.dma_semaphore, #tpu.memory_space<semaphore_mem>>)
      %c8_i32_70 = arith.constant 8 : i32
    } else {
    }
    %48 = arith.index_cast %0 : i32 to index
    %c0 = arith.constant 0 : index
    %c0_30 = arith.constant 0 : index
    %49 = vector.load %arg8[%48, %c0, %c0_30] : memref<2x8x128xf32, #tpu.memory_space<vmem>>, vector<1x8x128xf32>
    %50 = vector.shape_cast %49 : vector<1x8x128xf32> to vector<8x128xf32>
    %c0_31 = arith.constant 0 : index
    %c0_32 = arith.constant 0 : index
    %51 = vector.load %arg3[%c0_31, %c0_32] : memref<128x256xf32, #tpu.memory_space<vmem>>, vector<128x256xf32>
    %cst = arith.constant dense<0.000000e+00> : vector<8x256xf32>
    %52 = tpu.matmul %50, %51, %cst {dimension_numbers = #tpu.dot_dimension_numbers<[1], [0], [0], [1], [0, 0, 1, 1], [], []>} : vector<8x128xf32>, vector<128x256xf32>, vector<8x256xf32> -> vector<8x256xf32>
    %c0_33 = arith.constant 0 : index
    %c0_34 = arith.constant 0 : index
    %53 = vector.load %arg4[%c0_33, %c0_34] : memref<1x256xf32, #tpu.memory_space<vmem>>, vector<1x256xf32>
    %54 = vector.broadcast %53 : vector<1x256xf32> to vector<8x256xf32>
    %55 = arith.addf %52, %54 : vector<8x256xf32>
    %cst_35 = arith.constant 0.000000e+00 : f32
    %56 = vector.broadcast %cst_35 : f32 to vector<8x256xf32>
    %57 = arith.maximumf %55, %56 : vector<8x256xf32>
    %c0_36 = arith.constant 0 : index
    %c0_37 = arith.constant 0 : index
    %58 = vector.load %arg5[%c0_36, %c0_37] : memref<1x256xf32, #tpu.memory_space<vmem>>, vector<1x256xf32>
    %59 = vector.broadcast %58 : vector<1x256xf32> to vector<8x256xf32>
    %60 = arith.mulf %57, %59 : vector<8x256xf32>
    %cst_38 = arith.constant dense<0.000000e+00> : vector<8xf32>
    %61 = vector.multi_reduction <add>, %60, %cst_38 [1] : vector<8x256xf32> to vector<8xf32>
    %c0_39 = arith.constant 0 : index
    %c0_40 = arith.constant 0 : index
    %62 = vector.load %arg6[%c0_39, %c0_40] : memref<1x1xf32, #tpu.memory_space<vmem>>, vector<1x1xf32>
    %63 = vector.shape_cast %62 : vector<1x1xf32> to vector<1xf32>
    %64 = vector.broadcast %63 : vector<1xf32> to vector<8xf32>
    %65 = arith.addf %61, %64 : vector<8xf32>
    %c0_41 = arith.constant 0 : index
    %c0_42 = arith.constant 0 : index
    %66 = vector.load %arg7[%c0_41, %c0_42] : memref<1x8xf32, #tpu.memory_space<vmem>>, vector<1x8xf32>
    %67 = vector.shape_cast %66 : vector<1x8xf32> to vector<8xf32>
    %68 = vector.shape_cast %65 : vector<8xf32> to vector<1x8xf32>
    tpu.vector_store %arg7[%c0_41, %c0_42], %68 {strides = array<i32>} : memref<1x8xf32, #tpu.memory_space<vmem>>, vector<1x8xf32>,
    return
  }
  func.func @transform_1(%arg0: i32, %arg1: memref<8xi32, #tpu.memory_space<smem>>) -> (i32, i32) {
    %c0_i32 = arith.constant 0 : i32
    %c0_i32_0 = arith.constant 0 : i32
    %c0_i32_1 = arith.constant 0 : i32
    return %c0_i32, %c0_i32_0 : i32, i32
  }
  func.func @transform_2(%arg0: i32, %arg1: memref<8xi32, #tpu.memory_space<smem>>) -> (i32, i32) {
    %c0_i32 = arith.constant 0 : i32
    %c0_i32_0 = arith.constant 0 : i32
    %c0_i32_1 = arith.constant 0 : i32
    return %c0_i32, %c0_i32_0 : i32, i32
  }
  func.func @transform_3(%arg0: i32, %arg1: memref<8xi32, #tpu.memory_space<smem>>) -> (i32, i32) {
    %c0_i32 = arith.constant 0 : i32
    %c0_i32_0 = arith.constant 0 : i32
    %c0_i32_1 = arith.constant 0 : i32
    return %c0_i32, %c0_i32_0 : i32, i32
  }
  func.func @transform_4(%arg0: i32, %arg1: memref<8xi32, #tpu.memory_space<smem>>) -> (i32, i32) {
    %c0_i32 = arith.constant 0 : i32
    %c0_i32_0 = arith.constant 0 : i32
    %c0_i32_1 = arith.constant 0 : i32
    return %c0_i32, %c0_i32_0 : i32, i32
  }
  func.func @transform_5(%arg0: i32, %arg1: memref<8xi32, #tpu.memory_space<smem>>) -> (i32, i32) {
    %c0_i32 = arith.constant 0 : i32
    %c0_i32_0 = arith.constant 0 : i32
    return %c0_i32, %arg0 : i32, i32
  }
}

</mosaic_0001>

<bundles_post_ra>
// kernel: tpu_custom_call.1
= control target key start
LH: loop header
LB: loop body
LE: loop exit
PB: predicated region body
PF: predicated region fallthrough
CT: control target
= control target key end

     0   :  { %s1053_s0 = inlined_call_operand.vmem [shape: s32[8], index: 0, kind: input, shape index: {}]   ;;  %s1054_s1 = inlined_call_operand.hbm [shape: f32[320,128], index: 1, kind: input, shape index: {}]   ;;  %s1055_s2 = inlined_call_operand.hbm [shape: f32[128,256], index: 2, kind: input, shape index: {}]   ;;  %s1056_s3 = inlined_call_operand.vmem [shape: f32[1,256], index: 3, kind: input, shape index: {}]   ;;  %s1057_s4 = inlined_call_operand.vmem [shape: f32[1,256], index: 4, kind: input, shape index: {}]   ;;  %s1058_s6 = inlined_call_operand.hbm [shape: f32[1,8], index: 6, kind: output, shape index: {}]   ;;  %s1059_s5 = inlined_call_operand.<no memory space> [shape: f32[1,1], index: 5, kind: input, shape index: {}]  }
   0x1   :  { %s11_s23 = sshll.u32 %s1053_s0, 4  ;;  %v15_v0 = vstv %s1059_s5  ;;  %s12_s23 = int_to_ptr.vmem [resolvable:$true] %s11_s23 }
   0x2   :  { %16 = vst [vmem:[#allocation6] sm:$0x1] %v15_v0  ;;  %s618_s26 = scalar_lea.vmem %s12_s23, 16  ;;  %p623_p1 = scmp.lt.s32.totalorder %s12_s23, %s12_s23 }
   0x3   :  { %p619_p0 = scmp.ne.s32.totalorder %s12_s23, %s618_s26  ;;  %p624_p2 = scmp.lt.s32.totalorder %s618_s26, %s618_s26 }
   0x5   :  { %p625_p3 = por %p624_p2, %p623_p1 }
   0x7   :  { %p626_p4 = pnand %p625_p3, %p619_p0 }
   0x9   :  { %629 = shalt.err (!%p626_p4)  }
   0xa   :  { %s854_s27 = smov [#allocation5]  }
   0xb   :  { %14 = dma.vmem_to_smem %s12_s23, 16, %s854_s27, [#allocation4] }
   0xc   :  { %846 = dma.done.wait [#allocation4], 16 }
   0xd   :  { %847 = vsyncadd [#allocation4], 4294967280 }
   0xe   :  { %18 = sfence }
   0xf   :  { %19 = vsyncpa [#allocation8], 0 }
  0x10   :  { %20 = vsyncpa [#allocation9], 0  ;;  %s855_s0 = smov [#allocation7]  }
  0x11   :  { %s26_s28 = sshll.u32 %s855_s0, 4  ;;  %s27_s28 = int_to_ptr.vmem [resolvable:$true] %s26_s28 }
  0x12   :  { %s638_s5 = scalar_lea.vmem %s27_s28, 4096  ;;  %p643_p6 = scmp.lt.s32.totalorder %s27_s28, %s27_s28 }
  0x13   :  { %p639_p5 = scmp.ne.s32.totalorder %s27_s28, %s638_s5  ;;  %p644_p7 = scmp.lt.s32.totalorder %s638_s5, %s638_s5 }
  0x15   :  { %p645_p8 = por %p644_p7, %p643_p6 }
  0x17   :  { %p646_p9 = pnand %p645_p8, %p639_p5 }
  0x19   :  { %649 = shalt.err (!%p646_p9)
}
  0x1a   :  { %s856_s29 = smov 256   ;;  %s857_s30 = smov 16  }
  0x1b   :  { %32 = dma.hbm_to_vmem [thread:$0]  %s1055_s2, 4096, %s27_s28, [#allocation8], %s856_s29, %s856_s29, %s857_s30  }
  0x1c   :  { %848 = dma.done.wait [#allocation8], 4096  }
  0x1d   :  { %849 = vsyncadd [#allocation8], 4294963200  ;;  %s48_s9 = sld [smem:[#allocation5]]  ;;  %s858_s10 = smov [#allocation2]  }
  0x1e   :  { %s58_s11 = sshll.u32 %s858_s10, 4  ;;  %s915_s12 = sld [smem:[#allocation5 + $0x1]]  ;;  %s913_s11 = int_to_ptr.vmem [resolvable:$true] %s58_s11 }
  0x1f   :  { %s859_s13 = smov [#allocation2 + $0x1]   ;;  %s917_s15 = sld [smem:[#allocation5 + $0x2]] }
  0x20   :  { %s73_s14 = sshll.u32 %s859_s13, 4  ;;  %s860_s16 = smov [#allocation2 + $0x2]   ;;  %s919_s14 = int_to_ptr.vmem [resolvable:$true] %s73_s14 }
  0x21   :  { %s88_s17 = sshll.u32 %s860_s16, 4  ;;  %s921_s18 = sld [smem:[#allocation5 + $0x3]]  ;;  %s923_s17 = int_to_ptr.vmem [resolvable:$true] %s88_s17 }
  0x22   :  { %s861_s19 = smov [#allocation2 + $0x3]   ;;  %s934_s0 = scalar_lea.hbm %s1054_s1, 5120 }
  0x23   :  { %s569_s2 = sshll.u32 %s48_s9, 4  ;;  %s925_s20 = sshll.u32 %s861_s19, 4  ;;  %s104_s20 = int_to_ptr.vmem [resolvable:$true] %s925_s20 }
  0x24   :  { %s50_s23 = scalar_lea.hbm %s1054_s1, %s569_s2  ;;  %s571_s24 = sshll.u32 %s915_s12, 4 }
  0x25   :  { %s650_s25 = scalar_lea.hbm %s50_s23, 16  ;;  %p653_p11 = scmp.lt.s32.totalorder %s50_s23, %s1054_s1 }
  0x26   :  { %p651_p10 = scmp.ne.s32.totalorder %s50_s23, %s650_s25  ;;  %p654_p12 = scmp.lt.s32.totalorder %s934_s0, %s650_s25 }
  0x28   :  { %p655_p13 = por %p654_p12, %p653_p11 }
  0x2a   :  { %p656_p0 = pnand %p655_p13, %p651_p10 }
  0x2c   :  { %659 = shalt.err (!%p656_p0)  }
  0x2d   :  { %s660_s29 = scalar_lea.vmem %s913_s11, 16  ;;  %s943_s30 = scalar_lea.vmem %s913_s11, 256 }
  0x2e   :  { %p661_p1 = scmp.ne.s32.totalorder %s913_s11, %s660_s29  ;;  %p665_p2 = scmp.lt.s32.totalorder %s913_s11, %s913_s11 }
  0x2f   :  { %p666_p3 = scmp.lt.s32.totalorder %s943_s30, %s660_s29 }
  0x31   :  { %p667_p4 = por %p666_p3, %p665_p2 }
  0x33   :  { %p668_p5 = pnand %p667_p4, %p661_p1 }
  0x35   :  { %671 = shalt.err (!%p668_p5)  }
  0x36   :  { %61 = dma.hbm_to_vmem [thread:$0]  %s50_s23, 16, %s913_s11, [#allocation3] }
  0x37   :  { %s64_s9 = scalar_lea.hbm %s1054_s1, %s571_s24  ;;  %s573_s10 = sshll.u32 %s917_s15, 4 }
  0x38   :  { %s672_s12 = scalar_lea.hbm %s64_s9, 16  ;;  %p675_p7 = scmp.lt.s32.totalorder %s64_s9, %s1054_s1 }
  0x39   :  { %p673_p6 = scmp.ne.s32.totalorder %s64_s9, %s672_s12  ;;  %p676_p8 = scmp.lt.s32.totalorder %s934_s0, %s672_s12 }
  0x3b   :  { %p677_p9 = por %p676_p8, %p675_p7 }
  0x3d   :  { %p678_p10 = pnand %p677_p9, %p673_p6 }
  0x3f   :  { %681 = shalt.err (!%p678_p10)  }
  0x40   :  { %s682_s2 = scalar_lea.vmem %s919_s14, 16  ;;  %p687_p12 = scmp.lt.s32.totalorder %s919_s14, %s913_s11 }
  0x41   :  { %p683_p11 = scmp.ne.s32.totalorder %s919_s14, %s682_s2  ;;  %p688_p13 = scmp.lt.s32.totalorder %s943_s30, %s682_s2 }
  0x43   :  { %p689_p0 = por %p688_p13, %p687_p12 }
  0x45   :  { %p690_p1 = pnand %p689_p0, %p683_p11 }
  0x47   :  { %693 = shalt.err (!%p690_p1)  }
  0x48   :  { %76 = dma.hbm_to_vmem [thread:$0]  %s64_s9, 16, %s919_s14, [#allocation3] }
  0x49   :  { %s79_s21 = scalar_lea.hbm %s1054_s1, %s573_s10  ;;  %s575_s22 = sshll.u32 %s921_s18, 4 }
  0x4a   :  { %s694_s23 = scalar_lea.hbm %s79_s21, 16  ;;  %p697_p3 = scmp.lt.s32.totalorder %s79_s21, %s1054_s1 }
  0x4b   :  { %p695_p2 = scmp.ne.s32.totalorder %s79_s21, %s694_s23  ;;  %p698_p4 = scmp.lt.s32.totalorder %s934_s0, %s694_s23 }
  0x4d   :  { %p699_p5 = por %p698_p4, %p697_p3 }
  0x4f   :  { %p700_p6 = pnand %p699_p5, %p695_p2 }
  0x51   :  { %703 = shalt.err (!%p700_p6)  }
  0x52   :  { %s704_s14 = scalar_lea.vmem %s923_s17, 16  ;;  %p709_p8 = scmp.lt.s32.totalorder %s923_s17, %s913_s11 }
  0x53   :  { %p705_p7 = scmp.ne.s32.totalorder %s923_s17, %s704_s14  ;;  %p710_p9 = scmp.lt.s32.totalorder %s943_s30, %s704_s14 }
  0x55   :  { %p711_p10 = por %p710_p9, %p709_p8 }
  0x57   :  { %p712_p11 = pnand %p711_p10, %p705_p7 }
  0x59   :  { %715 = shalt.err (!%p712_p11)  }
  0x5a   :  { %91 = dma.hbm_to_vmem [thread:$0]  %s79_s21, 16, %s923_s17, [#allocation3] }
  0x5b   :  { %s94_s27 = scalar_lea.hbm %s1054_s1, %s575_s22 }
  0x5c   :  { %s716_s28 = scalar_lea.hbm %s94_s27, 16  ;;  %p719_p13 = scmp.lt.s32.totalorder %s94_s27, %s1054_s1 }
  0x5d   :  { %p717_p12 = scmp.ne.s32.totalorder %s94_s27, %s716_s28  ;;  %p720_p0 = scmp.lt.s32.totalorder %s934_s0, %s716_s28 }
  0x5f   :  { %p721_p1 = por %p720_p0, %p719_p13 }
  0x61   :  { %p722_p2 = pnand %p721_p1, %p717_p12 }
  0x63   :  { %725 = shalt.err (!%p722_p2)  }
  0x64   :  { %s726_s7 = scalar_lea.vmem %s104_s20, 16  ;;  %p731_p4 = scmp.lt.s32.totalorder %s104_s20, %s913_s11 }
  0x65   :  { %p727_p3 = scmp.ne.s32.totalorder %s104_s20, %s726_s7  ;;  %p732_p5 = scmp.lt.s32.totalorder %s943_s30, %s726_s7 }
  0x67   :  { %p733_p6 = por %p732_p5, %p731_p4 }
  0x69   :  { %p734_p7 = pnand %p733_p6, %p727_p3 }
  0x6b   :  { %737 = shalt.err (!%p734_p7)  }
  0x6c   :  { %106 = dma.hbm_to_vmem [thread:$0]  %s94_s27, 16, %s104_s20, [#allocation3] }
  0x6d   :  { %s576_s17 = sld [smem:[#allocation5 + $0x4]]  ;;  %s862_s8 = smov [#allocation2 + $0x4]  }
  0x6e   :  { %s118_s9 = sshll.u32 %s862_s8, 4  ;;  %s987_s10 = sld [smem:[#allocation5 + $0x5]]  ;;  %s119_s9 = int_to_ptr.vmem [resolvable:$true] %s118_s9 }
  0x6f   :  { %s863_s12 = smov [#allocation2 + $0x5]   ;;  %s989_s16 = sld [smem:[#allocation5 + $0x6]] }
  0x70   :  { %s133_s13 = sshll.u32 %s863_s12, 4  ;;  %s864_s2 = smov [#allocation2 + $0x6]   ;;  %s991_s13 = int_to_ptr.vmem [resolvable:$true] %s133_s13 }
  0x71   :  { %s148_s15 = sshll.u32 %s864_s2, 4  ;;  %s993_s19 = sld [smem:[#allocation5 + $0x7]]  ;;  %s995_s15 = int_to_ptr.vmem [resolvable:$true] %s148_s15 }
  0x73   :  { %s577_s21 = sshll.u32 %s576_s17, 4 }
  0x74   :  { %s109_s23 = scalar_lea.hbm %s1054_s1, %s577_s21  ;;  %s579_s24 = sshll.u32 %s987_s10, 4 }
  0x75   :  { %s738_s25 = scalar_lea.hbm %s109_s23, 16  ;;  %p741_p9 = scmp.lt.s32.totalorder %s109_s23, %s1054_s1 }
  0x76   :  { %p739_p8 = scmp.ne.s32.totalorder %s109_s23, %s738_s25  ;;  %p742_p10 = scmp.lt.s32.totalorder %s934_s0, %s738_s25 }
  0x78   :  { %p743_p11 = por %p742_p10, %p741_p9 }
  0x7a   :  { %p744_p12 = pnand %p743_p11, %p739_p8 }
  0x7c   :  { %747 = shalt.err (!%p744_p12)  }
  0x7d   :  { %s748_s26 = scalar_lea.vmem %s119_s9, 16  ;;  %p753_p0 = scmp.lt.s32.totalorder %s119_s9, %s913_s11 }
  0x7e   :  { %p749_p13 = scmp.ne.s32.totalorder %s119_s9, %s748_s26  ;;  %p754_p1 = scmp.lt.s32.totalorder %s943_s30, %s748_s26 }
  0x80   :  { %p755_p2 = por %p754_p1, %p753_p0 }
  0x82   :  { %p756_p3 = pnand %p755_p2, %p749_p13 }
  0x84   :  { %759 = shalt.err (!%p756_p3)  }
  0x85   :  { %121 = dma.hbm_to_vmem [thread:$0]  %s109_s23, 16, %s119_s9, [#allocation3] }
  0x86   :  { %s124_s5 = scalar_lea.hbm %s1054_s1, %s579_s24  ;;  %s581_s29 = sshll.u32 %s989_s16, 4 }
  0x87   :  { %s760_s7 = scalar_lea.hbm %s124_s5, 16  ;;  %p763_p5 = scmp.lt.s32.totalorder %s124_s5, %s1054_s1 }
  0x88   :  { %p761_p4 = scmp.ne.s32.totalorder %s124_s5, %s760_s7  ;;  %p764_p6 = scmp.lt.s32.totalorder %s934_s0, %s760_s7 }
  0x8a   :  { %p765_p7 = por %p764_p6, %p763_p5 }
  0x8c   :  { %p766_p8 = pnand %p765_p7, %p761_p4 }
  0x8e   :  { %769 = shalt.err (!%p766_p8)  }
  0x8f   :  { %s770_s9 = scalar_lea.vmem %s991_s13, 16  ;;  %p775_p10 = scmp.lt.s32.totalorder %s991_s13, %s913_s11 }
  0x90   :  { %p771_p9 = scmp.ne.s32.totalorder %s991_s13, %s770_s9  ;;  %p776_p11 = scmp.lt.s32.totalorder %s943_s30, %s770_s9 }
  0x92   :  { %p777_p12 = por %p776_p11, %p775_p10 }
  0x94   :  { %p778_p13 = pnand %p777_p12, %p771_p9 }
  0x96   :  { %781 = shalt.err (!%p778_p13)  }
  0x97   :  { %136 = dma.hbm_to_vmem [thread:$0]  %s124_s5, 16, %s991_s13, [#allocation3] }
  0x98   :  { %s139_s16 = scalar_lea.hbm %s1054_s1, %s581_s29  ;;  %s583_s2 = sshll.u32 %s993_s19, 4 }
  0x99   :  { %s782_s21 = scalar_lea.hbm %s139_s16, 16  ;;  %p785_p1 = scmp.lt.s32.totalorder %s139_s16, %s1054_s1 }
  0x9a   :  { %p783_p0 = scmp.ne.s32.totalorder %s139_s16, %s782_s21  ;;  %p786_p2 = scmp.lt.s32.totalorder %s934_s0, %s782_s21 }
  0x9c   :  { %p787_p3 = por %p786_p2, %p785_p1 }
  0x9e   :  { %p788_p4 = pnand %p787_p3, %p783_p0 }
  0xa0   :  { %791 = shalt.err (!%p788_p4)  }
  0xa1   :  { %s792_s13 = scalar_lea.vmem %s995_s15, 16  ;;  %p797_p6 = scmp.lt.s32.totalorder %s995_s15, %s913_s11 }
  0xa2   :  { %p793_p5 = scmp.ne.s32.totalorder %s995_s15, %s792_s13  ;;  %p798_p7 = scmp.lt.s32.totalorder %s943_s30, %s792_s13 }
  0xa4   :  { %p799_p8 = por %p798_p7, %p797_p6 }
  0xa6   :  { %p800_p9 = pnand %p799_p8, %p793_p5 }
  0xa8   :  { %803 = shalt.err (!%p800_p9)  }
  0xa9   :  { %151 = dma.hbm_to_vmem [thread:$0]  %s139_s16, 16, %s995_s15, [#allocation3] }
  0xaa   :  { %s154_s24 = scalar_lea.hbm %s1054_s1, %s583_s2  ;;  %s865_s25 = smov [#allocation2 + $0x7]  }
  0xab   :  { %s163_s14 = sshll.u32 %s865_s25, 4  ;;  %s804_s18 = scalar_lea.hbm %s154_s24, 16  ;;  %s164_s14 = int_to_ptr.vmem [resolvable:$true] %s163_s14 }
  0xac   :  { %p805_p10 = scmp.ne.s32.totalorder %s154_s24, %s804_s18  ;;  %p807_p11 = scmp.lt.s32.totalorder %s154_s24, %s1054_s1 }
  0xad   :  { %p808_p12 = scmp.lt.s32.totalorder %s934_s0, %s804_s18 }
  0xaf   :  { %p809_p13 = por %p808_p12, %p807_p11 }
  0xb1   :  { %p810_p0 = pnand %p809_p13, %p805_p10 }
  0xb3   :  { %813 = shalt.err (!%p810_p0)  }
  0xb4   :  { %s814_s28 = scalar_lea.vmem %s164_s14, 16  ;;  %p819_p2 = scmp.lt.s32.totalorder %s164_s14, %s913_s11 }
  0xb5   :  { %p815_p1 = scmp.ne.s32.totalorder %s164_s14, %s814_s28  ;;  %p820_p3 = scmp.lt.s32.totalorder %s943_s30, %s814_s28 }
  0xb7   :  { %p821_p4 = por %p820_p3, %p819_p2 }
  0xb9   :  { %p822_p5 = pnand %p821_p4, %p815_p1 }
  0xbb   :  { %825 = shalt.err (!%p822_p5)  }
  0xbc   :  { %166 = dma.hbm_to_vmem [thread:$0]  %s154_s24, 16, %s164_s14, [#allocation3] }
  0xbd   :  { %850 = dma.done.wait [#allocation3], 128 }
  0xbe   :  { %851 = vsyncadd [#allocation3], 4294967168  ;;  %v866_v1 = vmov 0.0   ;;  %v361_v2 = vld [vmem:[#allocation7 + $0xf8] sm:$0xff]  ;;  %v360_v3 = vld [vmem:[#allocation7 + $0xf0] sm:$0xff]  ;;  %v867_v35 = vmov 0   ;;  %v364_v36 = vlaneseq }
  0xbf   :  { %438 = vmatprep.mubr.f32.mxu0 %v866_v1  ;;  %v359_v4 = vld [vmem:[#allocation7 + $0xe8] sm:$0xff]  ;;  %374 = vmatprep.subr.mxu0 %v361_v2  ;;  %v358_v5 = vld [vmem:[#allocation7 + $0xe0] sm:$0xff]  ;;  %v357_v6 = vld [vmem:[#allocation7 + $0xd8] sm:$0xff]  ;;  %vm483_vm0 = vcmask 57344  }
  0xc0   :  { %375 = vmatpush1.msra.mxu0 %v360_v3  ;;  %v356_v7 = vld [vmem:[#allocation7 + $0xd0] sm:$0xff]  ;;  %v355_v8 = vld [vmem:[#allocation7 + $0xc8] sm:$0xff]  ;;  %v354_v9 = vld [vmem:[#allocation7 + $0xc0] sm:$0xff]  ;;  %617 = vset.pattern.permute.xlu0 %v867_v35  ;;  %v365_v37 = vshrl.u32 %v364_v36, 7  ;;  %v477_v57 = vand.u32 127, %v364_v36 }
  0xc1   :  { %376 = vmatprep.subr.mxu0 %v359_v4  ;;  %v353_v10 = vld [vmem:[#allocation7 + $0xb8] sm:$0xff]  ;;  %v352_v11 = vld [vmem:[#allocation7 + $0xb0] sm:$0xff]  ;;  %v351_v12 = vld [vmem:[#allocation7 + $0xa8] sm:$0xff] }
  0xc2   :  { %377 = vmatpush1.msra.mxu0 %v358_v5  ;;  %v350_v13 = vld [vmem:[#allocation7 + $0xa0] sm:$0xff]  ;;  %v349_v14 = vld [vmem:[#allocation7 + $0x98] sm:$0xff]  ;;  %v348_v15 = vld [vmem:[#allocation7 + $0x90] sm:$0xff]  ;;  %v366_v38 = vsub.s32 0, %v365_v37  ;;  %v370_v40 = vsub.s32 1, %v365_v37  ;;  %v480_v59 = vsub.s32 %v477_v57, %v365_v37 }
  0xc3   :  { %378 = vmatprep.subr.mxu0 %v357_v6  ;;  %v347_v16 = vld [vmem:[#allocation7 + $0x88] sm:$0xff]  ;;  %v346_v17 = vld [vmem:[#allocation7 + $0x80] sm:$0xff]  ;;  %v345_v18 = vld [vmem:[#allocation7 + $0x78] sm:$0xff] }
  0xc4   :  { %379 = vmatpush1.msra.mxu0 %v356_v7  ;;  %v344_v19 = vld [vmem:[#allocation7 + $0x70] sm:$0xff]  ;;  %v343_v20 = vld [vmem:[#allocation7 + $0x68] sm:$0xff]  ;;  %v342_v21 = vld [vmem:[#allocation7 + $0x60] sm:$0xff] }
  0xc5   :  { %380 = vmatprep.subr.mxu0 %v355_v8  ;;  %v341_v22 = vld [vmem:[#allocation7 + $0x58] sm:$0xff]  ;;  %v340_v23 = vld [vmem:[#allocation7 + $0x50] sm:$0xff]  ;;  %v339_v24 = vld [vmem:[#allocation7 + $0x48] sm:$0xff] }
  0xc6   :  { %381 = vmatpush1.msra.mxu0 %v354_v9  ;;  %v338_v25 = vld [vmem:[#allocation7 + $0x40] sm:$0xff]  ;;  %v337_v26 = vld [vmem:[#allocation7 + $0x38] sm:$0xff]  ;;  %v336_v27 = vld [vmem:[#allocation7 + $0x30] sm:$0xff] }
  0xc7   :  { %382 = vmatprep.subr.mxu0 %v353_v10  ;;  %v335_v28 = vld [vmem:[#allocation7 + $0x28] sm:$0xff]  ;;  %v334_v29 = vld [vmem:[#allocation7 + $0x20] sm:$0xff]  ;;  %v333_v30 = vld [vmem:[#allocation7 + $0x18] sm:$0xff] }
  0xc8   :  { %383 = vmatpush1.msra.mxu0 %v352_v11  ;;  %v332_v31 = vld [vmem:[#allocation7 + $0x10] sm:$0xff]  ;;  %v331_v32 = vld [vmem:[#allocation7 + $0x8] sm:$0xff]  ;;  %v330_v33 = vld [vmem:[#allocation7] sm:$0xff] }
  0xc9   :  { %384 = vmatprep.subr.mxu0 %v351_v12  ;;  %v329_v34 = vld [vmem:[#allocation2] sm:$0xff]  ;;  %v464_v55 = vld [vmem:[#allocation6] sm:$0x1] }
  0xca   :  { %385 = vmatpush1.msra.mxu0 %v350_v13  ;;  %v362_v39 = vld [vmem:[%s1056_s3] sm:$0x3]  ;;  %s868_s3 = smov [#allocation10]  }
  0xcb   :  { %386 = vmatprep.subr.mxu0 %v349_v14  ;;  %v367_v41 = vrot.slane %v362_v39, %v366_v38  ;;  %v371_v42 = vrot.slane %v362_v39, %v370_v40  ;;  %v447_v44 = vld [vmem:[%s1057_s4] sm:$0x3]  ;;  %s491_s4 = sshll.u32 %s868_s3, 4  ;;  %s492_s4 = int_to_ptr.vmem [resolvable:$true] %s491_s4 }
  0xcc   :  { %387 = vmatpush1.msra.mxu0 %v348_v15  ;;  %v452_v49 = vrot.slane %v447_v44, %v366_v38  ;;  %v456_v50 = vrot.slane %v447_v44, %v370_v40  ;;  %s826_s15 = scalar_lea.vmem %s492_s4, 16  ;;  %s830_s5 = scalar_lea.vmem %s492_s4, 32 }
  0xcd   :  { %388 = vmatprep.subr.mxu0 %v347_v16  ;;  %p827_p6 = scmp.ne.s32.totalorder %s492_s4, %s826_s15  ;;  %p831_p7 = scmp.lt.s32.totalorder %s492_s4, %s492_s4 }
  0xce   :  { %389 = vmatpush1.msra.mxu0 %v346_v17  ;;  %p832_p8 = scmp.lt.s32.totalorder %s830_s5, %s826_s15 }
  0xcf   :  { %390 = vmatprep.subr.mxu0 %v345_v18 }
  0xd0   :  { %391 = vmatpush1.msra.mxu0 %v344_v19  ;;  %p833_p9 = por %p832_p8, %p831_p7 }
  0xd1   :  { %392 = vmatprep.subr.mxu0 %v343_v20 }
  0xd2   :  { %393 = vmatpush1.msra.mxu0 %v342_v21  ;;  %p834_p10 = pnand %p833_p9, %p827_p6 }
  0xd3   :  { %394 = vmatprep.subr.mxu0 %v341_v22 }
  0xd4   :  { %395 = vmatpush1.msra.mxu0 %v340_v23 }
  0xd5   :  { %396 = vmatprep.subr.mxu0 %v339_v24 }
  0xd6   :  { %397 = vmatpush1.msra.mxu0 %v338_v25 }
  0xd7   :  { %398 = vmatprep.subr.mxu0 %v337_v26 }
  0xd8   :  { %399 = vmatpush1.msra.mxu0 %v336_v27 }
  0xd9   :  { %400 = vmatprep.subr.mxu0 %v335_v28 }
  0xda   :  { %401 = vmatpush1.msra.mxu0 %v334_v29 }
  0xdb   :  { %402 = vmatprep.subr.mxu0 %v333_v30 }
  0xdc   :  { %403 = vmatpush1.msra.mxu0 %v332_v31 }
  0xdd   :  { %404 = vmatprep.subr.mxu0 %v331_v32 }
  0xde   :  { %405 = vmatpush1.msra.mxu0 %v330_v33 }
  0xdf   :  { %439 = vmatmul.mubr.f32.vlgmr.msra.gmra.mxu0 %v329_v34 }
 0x19f   :  { %v440_v43 = vpop.f32.mrf.mxu0 }
 0x1a0   :  { %v441_v45 = vadd.f32 %v440_v43, %v367_v41 }
 0x1a1   :  { %v442_v46 = vpop.f32.mrf.mxu0 }
 0x1a2   :  { %v445_v47 = vmax.f32 %v441_v45, 0.0  ;;  %v443_v48 = vadd.f32 %v442_v46, %v371_v42 }
 0x1a4   :  { %v446_v51 = vmax.f32 %v443_v48, 0.0  ;;  %v459_v52 = vmul.f32 %v452_v49, %v445_v47 }
 0x1a6   :  { %v460_v53 = vmul.f32 %v456_v50, %v446_v51 }
 0x1a8   :  { %v461_v54 = vadd.f32 %v460_v53, %v459_v52 }
 0x1aa   :  { %462 = vadd.xlane.f32.xlu0 %v461_v54 }
 0x1c0   :  { %467 = vperm.xlu0 %617, %v464_v55  }
 0x233   :  { %v463_v56 = vpop.xlane.xlu0 %462 }
 0x23b   :  { %v468_v58 = vpop.permute.xlu0 %467 }
 0x23c   :  { %v473_v60 = vrot.slane %v468_v58, %v366_v38 }
 0x23e   :  { %v474_v61 = vadd.f32 %v473_v60, %v463_v56 }
 0x240   :  { %v481_v62 = vrot.slane %v474_v61, %v480_v59 }
 0x242   :  { %484 = vst.msk [vmem:[#allocation10] sm:$0x1] %vm483_vm0, %v481_v62 }
 0x243   :  { %837 = shalt.err (!%p834_p10)
}
 0x244   :  { %494 = dma.vmem_to_hbm [thread:$0]  %s492_s4, 16, %s1058_s6, [#allocation9]  }
 0x245   :  { %852 = dma.done.wait [#allocation9], 16  }
 0x246   :  { %853 = vsyncadd [#allocation9], 4294967280 }
 0x247   :  { %498 = vsyncpa [#allocation8], 1 }
 0x248   :  { %499 = vsyncpa [#allocation9], 1 }
 0x249   :  { %500 = vsyncmov [#allocation3] }
 0x24c   :  { %s501_s17 = vpop.sfrf %500 }
 0x24d   :  { %p600_p11 = scmp.ne.s32.totalorder %s501_s17, 0 }
 0x24f   :  { %505 = shalt.err (%p600_p11)  }
 0x250   :  { %507 = vsyncmov [#allocation3 + $0x1] }
 0x253   :  { %s508_s8 = vpop.sfrf %507 }
 0x254   :  { %p601_p12 = scmp.ne.s32.totalorder %s508_s8, 0 }
 0x256   :  { %512 = shalt.err (%p601_p12)  }

</bundles_post_ra>
